<compile_context>
chip_gen: v6e
topology: v6e:2x2x1
jax: 0.10.0
libtpu: 0.0.40
codegen_flags: <defaults>
</compile_context>

<pallas_src>
import functools

import jax
import jax.numpy as jnp
from jax import lax
from jax.experimental import pallas as pl
from jax.experimental.pallas import tpu as pltpu


# ----------------------------- small helpers -----------------------------

def _fit_tile(dim, target):
    """Largest power-of-two tile <= target that divides dim, else the full dim."""
    t = target
    while t > 128 and dim % t:
        t //= 2
    return t if dim % t == 0 else dim


def _pick_head_block(n_head, d_head):
    """Heads per grid step so the fused output block is ~128 lanes wide."""
    hb = min(n_head, max(1, 128 // d_head))
    while n_head % hb:
        hb -= 1
    return max(hb, 1)


@functools.lru_cache(maxsize=None)
def _vmem_limit_bytes():
    # ~half of physical VMEM: 64 MiB on v5e/v6e (128 MiB phys), 32 MiB on v7x (64 MiB).
    try:
        cap = pltpu.get_tpu_info().vmem_capacity_bytes
    except Exception:  # pragma: no cover - conservative fallback
        cap = 128 * 1024 * 1024
    return int(min(96 * 1024 * 1024, max(32 * 1024 * 1024, cap // 2)))


def _cparams(semantics):
    return pltpu.CompilerParams(dimension_semantics=semantics,
                                vmem_limit_bytes=_vmem_limit_bytes())


@functools.lru_cache(maxsize=None)
def _roll_mode(minor):
    """Probe pltpu.roll's rotation convention once (cached); fall back to concat."""
    if minor <= 2:
        return "concat"
    try:
        def probe(x_ref, o_ref):
            o_ref[...] = pltpu.roll(x_ref[...], 1, 2)

        x = lax.broadcasted_iota(jnp.int32, (2, 8, minor), 2)
        out = pl.pallas_call(
            probe, out_shape=jax.ShapeDtypeStruct((2, 8, minor), jnp.int32))(x)
        first = int(out[0, 0, 0])
        if first == minor - 1:
            return "pltpu_like_jnp_roll"      # positive shift moves data to higher idx
        if first == 1:
            return "pltpu_positive_is_left"   # positive shift moves data to lower idx
    except Exception:  # pragma: no cover - lowering not available
        pass
    return "concat"


def _roll_left(x, amt, mode):
    """Left-rotate minor axis by static `amt`: result[..., j] = x[..., (j+amt) % n]."""
    n = x.shape[-1]
    amt = amt % n
    if amt == 0:
        return x
    axis = x.ndim - 1
    if mode == "pltpu_like_jnp_roll":
        return pltpu.roll(x, n - amt, axis)          # XLU rotate slot
    if mode == "pltpu_positive_is_left":
        return pltpu.roll(x, amt, axis)
    return jnp.concatenate([x[..., amt:], x[..., :amt]], axis=-1)


# --------------------- tiled projection kernel: y = x @ W ---------------------

def _matmul_kernel(x_ref, w_ref, o_ref, acc_ref):
    @pl.when(pl.program_id(2) == 0)
    def _init():
        acc_ref[...] = jnp.zeros_like(acc_ref)

    acc_ref[...] += jnp.dot(x_ref[...], w_ref[...],
                            preferred_element_type=jnp.float32)

    @pl.when(pl.program_id(2) == pl.num_programs(2) - 1)
    def _store():
        o_ref[...] = acc_ref[...].astype(o_ref.dtype)


def linear_nobias(x, w_t, *, tm=512, tn=512, tk=512):
    """nn.Linear(bias=False): x (M, K) @ w_t (K, N) -> (M, N).

    The weight is pre-transposed once at the XLA level so the kernel's dot is a
    plain (m,k)x(k,n) contraction (no per-tile in-kernel RHS transposes)."""
    M, K = x.shape
    K2, N = w_t.shape
    assert K == K2
    tm, tn, tk = _fit_tile(M, tm), _fit_tile(N, tn), _fit_tile(K, tk)
    return pl.pallas_call(
        _matmul_kernel,
        out_shape=jax.ShapeDtypeStruct((M, N), x.dtype),
        grid=(M // tm, N // tn, K // tk),
        in_specs=[pl.BlockSpec((tm, tk), lambda i, j, k: (i, k)),
                  pl.BlockSpec((tk, tn), lambda i, j, k: (k, j))],
        out_specs=pl.BlockSpec((tm, tn), lambda i, j, k: (i, j)),
        scratch_shapes=[pltpu.VMEM((tm, tn), jnp.float32)],
        compiler_params=_cparams(("parallel", "parallel", "arbitrary")),
    )(x, w_t)


# ------------------- fused relative attention (per batch, head-group) -------------------

def _rel_attn_kernel(q_ref, k_ref, v_ref, rk_ref, rwb_ref, rrb_ref, o_ref, *,
                     mlen, causal, roll_mode):
    hb, Q, D = q_ref.shape[1], q_ref.shape[2], q_ref.shape[3]
    K = k_ref.shape[2]
    R = rk_ref.shape[1]

    q = q_ref[0].astype(jnp.float32)            # (hb, Q, D); 1/sqrt(d) already folded in
    k = k_ref[0]                                # (hb, K, D)
    v = v_ref[0]                                # (hb, K, D)
    rk = rk_ref[...]                            # (hb, R, D)
    rwb = rwb_ref[0].astype(jnp.float32)        # (hb, D), pre-scaled
    rrb = rrb_ref[0].astype(jnp.float32)

    cdt = k.dtype                               # MXU operand dtype follows input (bf16 -> bf16 MXU)
    q_rw = (q + rwb[:, None, :]).astype(cdt)
    q_rr = (q + rrb[:, None, :]).astype(cdt)

    # Head-batched MXU matmuls with f32 accumulation (no per-head unroll of (Q,K) temps).
    ac = jnp.einsum('hqd,hkd->hqk', q_rw, k, preferred_element_type=jnp.float32)   # (hb,Q,K)
    bd = jnp.einsum('hqd,hrd->hqr', q_rr, rk, preferred_element_type=jnp.float32)  # (hb,Q,R)

    # Transformer-XL rel_shift in VMEM: shifted[i, j] = bd[i, (j + Q-1-i) mod R].
    # Per-row left rotation decomposed into log2 static XLU rolls + per-row selects.
    # The wrap-around region coincides with the causally masked "future" keys.
    if Q > 1:
        row = lax.broadcasted_iota(jnp.int32, (1, Q, 1), 1)
        remaining = (Q - 1) - row
        for bit in reversed(range((Q - 1).bit_length())):
            amt = 1 << bit
            take = remaining >= amt
            bd = jnp.where(take, _roll_left(bd, amt, roll_mode), bd)
            remaining = jnp.where(take, remaining - amt, remaining)

    score = ac + bd                             # (hb, Q, K); R == K

    if causal:
        # Mask generated in-kernel (no (qlen, klen) HBM mask traffic): j > i + mlen is future.
        col = lax.broadcasted_iota(jnp.int32, (1, Q, K), 2)
        rowq = lax.broadcasted_iota(jnp.int32, (1, Q, K), 1)
        score = jnp.where(col > rowq + mlen, jnp.float32(-1e30), score)

    m = jnp.max(score, axis=-1, keepdims=True)
    e = jnp.exp(score - m)
    denom = jnp.sum(e, axis=-1, keepdims=True)
    p = (e * pl.reciprocal(denom, approx=True)).astype(v.dtype)   # softmax over klen

    av = jnp.einsum('hqk,hkd->hqd', p, v, preferred_element_type=jnp.float32)  # (hb,Q,D)

    # Single lane-dense store of the whole head-group: (Q, hb*D).
    out = jnp.concatenate([av[h] for h in range(hb)], axis=-1)
    o_ref[0, 0] = out.astype(o_ref.dtype)


def rel_attention(q, k, v, rk, rwb, rrb, *, qlen, klen, rlen, bsz, n_groups, hb,
                  d_head, mlen, causal, out_dtype):
    gd = hb * d_head
    kernel = functools.partial(_rel_attn_kernel, mlen=mlen, causal=causal,
                               roll_mode=_roll_mode(rlen))
    # TODO(synk): add a third "arbitrary" K-axis with online softmax (flash-style)
    #             and skip fully-masked K tiles for long mems.
    return pl.pallas_call(
        kernel,
        out_shape=jax.ShapeDtypeStruct((bsz, n_groups, qlen, gd), out_dtype),
        grid=(bsz, n_groups),
        in_specs=[
            pl.BlockSpec((1, hb, qlen, d_head), lambda b, g: (b, g, 0, 0)),
            pl.BlockSpec((1, hb, klen, d_head), lambda b, g: (b, g, 0, 0)),
            pl.BlockSpec((1, hb, klen, d_head), lambda b, g: (b, g, 0, 0)),
            pl.BlockSpec((hb, rlen, d_head), lambda b, g: (g, 0, 0)),
            pl.BlockSpec((1, hb, d_head), lambda b, g: (g, 0, 0)),
            pl.BlockSpec((1, hb, d_head), lambda b, g: (g, 0, 0)),
        ],
        out_specs=pl.BlockSpec((1, 1, qlen, gd), lambda b, g: (b, g, 0, 0)),
        compiler_params=_cparams(("parallel", "parallel")),
    )(q, k, v, rk, rwb, rrb)


# ------------------- o_net projection + residual + LayerNorm -------------------

def _o_ln_kernel(av_ref, wo_ref, res_ref, g_ref, b_ref, o_ref, *, eps):
    attn_out = jnp.dot(av_ref[...], wo_ref[...], preferred_element_type=jnp.float32)
    h = res_ref[...].astype(jnp.float32) + attn_out
    mu = jnp.mean(h, axis=-1, keepdims=True)
    var = jnp.mean(jnp.square(h - mu), axis=-1, keepdims=True)
    y = (h - mu) * lax.rsqrt(var + eps)
    o_ref[...] = (y * g_ref[...].astype(jnp.float32)
                  + b_ref[...].astype(jnp.float32)).astype(o_ref.dtype)


def out_proj_layernorm(attn_vec, w_o_t, resid, gamma, beta, *, eps=1e-5, tm=512):
    M, H = attn_vec.shape
    d_model = w_o_t.shape[1]
    tm = _fit_tile(M, tm)
    kernel = functools.partial(_o_ln_kernel, eps=eps)
    return pl.pallas_call(
        kernel,
        out_shape=jax.ShapeDtypeStruct((M, d_model), resid.dtype),
        grid=(M // tm,),
        in_specs=[
            pl.BlockSpec((tm, H), lambda i: (i, 0)),
            pl.BlockSpec((H, d_model), lambda i: (0, 0)),   # W_o pre-transposed once
            pl.BlockSpec((tm, d_model), lambda i: (i, 0)),
            pl.BlockSpec((1, d_model), lambda i: (0, 0)),
            pl.BlockSpec((1, d_model), lambda i: (0, 0)),
        ],
        out_specs=pl.BlockSpec((tm, d_model), lambda i: (i, 0)),
        compiler_params=_cparams(("parallel",)),
    )(attn_vec, w_o_t, resid, gamma, beta)


# ------------------------------- forward (glue) -------------------------------

def rel_partial_mha_forward(w, r, r_w_bias, r_r_bias, params, attn_mask=None, mems=None):
    n_head, d_head = params["n_head"], params["d_head"]
    qlen, bsz, d_model = w.shape
    rlen = r.shape[0]
    H = n_head * d_head
    scale = 1.0 / (d_head ** 0.5)

    cat = w if mems is None else jnp.concatenate([mems, w], axis=0)
    klen = cat.shape[0]
    mlen = klen - qlen
    assert rlen == klen, "Transformer-XL expects rlen == klen"

    # Fold the softmax scale into the q rows of W_qkv (once) and into the biases;
    # pre-transpose weights once so the GEMM kernels take a plain (K, N) RHS.
    w_qkv = params["W_qkv"]
    w_qkv = w_qkv.at[:H].multiply(jnp.array(scale, dtype=w_qkv.dtype))
    w_qkv_t = w_qkv.T                       # (d_model, 3H)
    w_r_t = params["W_r"].T                 # (d_model, H)
    w_o_t = params["W_o"].T                 # (H, d_model)

    # qkv_net / r_net projections (tiled Pallas GEMMs, f32 accumulation).
    w_heads = linear_nobias(cat.reshape(klen * bsz, d_model), w_qkv_t)  # (klen*bsz, 3H)
    r_head_k = linear_nobias(r, w_r_t)                                   # (rlen, H)

    hb = _pick_head_block(n_head, d_head)
    ng = n_head // hb

    # Layout plumbing (XLA transposes) to head-major (b, h, s, d) blocks: kernel-side
    # operands are directly batched over the head-group and the output store is one
    # lane-dense (qlen, hb*d_head) slab. The q slice for mems fuses into this copy.
    wh = w_heads.reshape(klen, bsz, 3, n_head, d_head)
    q = jnp.transpose(wh[mlen:, :, 0], (1, 2, 0, 3))   # (bsz, n_head, qlen, d_head)
    k = jnp.transpose(wh[:, :, 1], (1, 2, 0, 3))       # (bsz, n_head, klen, d_head)
    v = jnp.transpose(wh[:, :, 2], (1, 2, 0, 3))       # (bsz, n_head, klen, d_head)
    rk = jnp.transpose(r_head_k.reshape(rlen, n_head, d_head), (1, 0, 2))

    rwb = (r_w_bias.astype(jnp.float32) * scale).reshape(ng, hb, d_head)
    rrb = (r_r_bias.astype(jnp.float32) * scale).reshape(ng, hb, d_head)

    if attn_mask is None or not bool(jnp.any(attn_mask)):
        causal = False
        # TODO(synk): without the causal mask the circular in-VMEM rel_shift differs
        #             from torch's zero/next-row fill in the (future) wrap region.
    else:
        causal = True
        expected = (lax.broadcasted_iota(jnp.int32, (qlen, klen), 1)
                    > lax.broadcasted_iota(jnp.int32, (qlen, klen), 0) + mlen)
        got = jnp.asarray(attn_mask).reshape(qlen, klen).astype(bool)
        if not bool(jnp.array_equal(got, expected)):
            raise NotImplementedError(
                "only the standard Transformer-XL causal(+mem) attn_mask is supported")

    attn = rel_attention(q, k, v, rk, rwb, rrb, qlen=qlen, klen=klen, rlen=rlen,
                         bsz=bsz, n_groups=ng, hb=hb, d_head=d_head,
                         mlen=mlen, causal=causal, out_dtype=w.dtype)
    # (bsz, ng, qlen, hb*d_head) -> (qlen*bsz, H) rows in (seq, batch) order.
    attn_vec = jnp.transpose(attn, (2, 0, 1, 3)).reshape(qlen * bsz, H)

    out = out_proj_layernorm(attn_vec, w_o_t, w.reshape(qlen * bsz, d_model),
                             params["ln_gamma"].reshape(1, d_model),
                             params["ln_beta"].reshape(1, d_model))
    return out.reshape(qlen, bsz, d_model)


# ----------------------------- pure-JAX reference -----------------------------

def reference_forward(w, r, r_w_bias, r_r_bias, params, attn_mask):
    n_head, d_head = params["n_head"], params["d_head"]
    qlen, bsz, d_model = w.shape
    rlen = r.shape[0]
    scale = 1.0 / (d_head ** 0.5)

    w_heads = jnp.einsum("ibm,hm->ibh", w, params["W_qkv"])
    r_head_k = jnp.einsum("jm,hm->jh", r, params["W_r"])
    q, k, v = jnp.split(w_heads, 3, axis=-1)
    klen = k.shape[0]
    q = q.reshape(qlen, bsz, n_head, d_head)
    k = k.reshape(klen, bsz, n_head, d_head)
    v = v.reshape(klen, bsz, n_head, d_head)
    r_head_k = r_head_k.reshape(rlen, n_head, d_head)

    AC = jnp.einsum("ibnd,jbnd->ijbn", q + r_w_bias, k)
    BD = jnp.einsum("ibnd,jnd->ijbn", q + r_r_bias, r_head_k)
    zp = jnp.zeros((qlen, 1, bsz, n_head), BD.dtype)
    BD = jnp.concatenate([zp, BD], axis=1).reshape(rlen + 1, qlen, bsz, n_head)
    BD = BD[1:].reshape(qlen, rlen, bsz, n_head)

    score = (AC + BD) * scale
    mask = attn_mask.reshape(qlen, klen).astype(bool)
    score = jnp.where(mask[:, :, None, None], -jnp.inf, score)
    prob = jax.nn.softmax(score, axis=1)
    av = jnp.einsum("ijbn,jbnd->ibnd", prob, v).reshape(qlen, bsz, n_head * d_head)
    out = jnp.einsum("ibh,mh->ibm", av, params["W_o"])
    h = w + out
    mu = h.mean(-1, keepdims=True)
    var = ((h - mu) ** 2).mean(-1, keepdims=True)
    return (h - mu) / jnp.sqrt(var + 1e-5) * params["ln_gamma"] + params["ln_beta"]


# ----------------------------------- main -----------------------------------

if __name__ == "__main__":
    n_head, d_head, d_model = 2, 16, 32
    qlen, bsz = 8, 2
    rlen = qlen  # mems=None -> klen == qlen == rlen

    key = jax.random.PRNGKey(0)
    ks = jax.random.split(key, 8)

    params = {
        "n_head": n_head,
        "d_head": d_head,
        # nn.Linear weights are (out_features, in_features)
        "W_qkv": 0.02 * jax.random.normal(ks[0], (3 * n_head * d_head, d_model), jnp.float32),
        "W_r":   0.02 * jax.random.normal(ks[1], (n_head * d_head, d_model), jnp.float32),
        "W_o":   0.02 * jax.random.normal(ks[2], (d_model, n_head * d_head), jnp.float32),
        "ln_gamma": jnp.ones((d_model,), jnp.float32),
        "ln_beta":  jnp.zeros((d_model,), jnp.float32),
    }

    w = jax.random.normal(ks[3], (qlen, bsz, d_model), jnp.float32)
    r = jax.random.normal(ks[4], (rlen, d_model), jnp.float32)
    r_w_bias = 0.02 * jax.random.normal(ks[5], (n_head, d_head), jnp.float32)
    r_r_bias = 0.02 * jax.random.normal(ks[6], (n_head, d_head), jnp.float32)
    # standard causal mask, shape (qlen, klen, 1) bool (torch dim()==3 branch)
    attn_mask = jnp.triu(jnp.ones((qlen, rlen), jnp.bool_), k=1)[:, :, None]

    # ---- f32 path: exact parity with the torch-equivalent reference ----
    out = rel_partial_mha_forward(w, r, r_w_bias, r_r_bias, params,
                                  attn_mask=attn_mask, mems=None)
    out = jax.block_until_ready(out)
    ref = reference_forward(w, r, r_w_bias, r_r_bias, params, attn_mask)
    assert out.shape == (qlen, bsz, d_model)
    assert bool(jnp.allclose(out, ref, rtol=2e-3, atol=2e-3)), "mismatch vs reference"

    # ---- bf16 path: bf16 MXU operands / halved HBM bytes, f32 accumulation ----
    bf = jnp.bfloat16
    params_bf = dict(params,
                     W_qkv=params["W_qkv"].astype(bf), W_r=params["W_r"].astype(bf),
                     W_o=params["W_o"].astype(bf),
                     ln_gamma=params["ln_gamma"].astype(bf),
                     ln_beta=params["ln_beta"].astype(bf))
    out_bf = rel_partial_mha_forward(w.astype(bf), r.astype(bf), r_w_bias.astype(bf),
                                     r_r_bias.astype(bf), params_bf,
                                     attn_mask=attn_mask, mems=None)
    out_bf = jax.block_until_ready(out_bf)
    assert out_bf.shape == (qlen, bsz, d_model)
    assert bool(jnp.all(jnp.isfinite(out_bf.astype(jnp.float32))))
    assert float(jnp.max(jnp.abs(out_bf.astype(jnp.float32) - ref))) < 0.25

    print("KERNEL_OK")
</pallas_src>

<mosaic_0001>
module attributes {stable_mosaic.version = 11 : i64} {
  func.func @_matmul_kernel(%arg0: i32, %arg1: i32, %arg2: i32, %arg3: memref<16x32xf32, #tpu.memory_space<vmem>>, %arg4: memref<32x96xf32, #tpu.memory_space<vmem>>, %arg5: memref<16x96xf32, #tpu.memory_space<vmem>>, %arg6: memref<16x96xf32, #tpu.memory_space<vmem>>) attributes {dimension_semantics = [#tpu.dimension_semantics<parallel>, #tpu.dimension_semantics<parallel>, #tpu.dimension_semantics<arbitrary>], iteration_bounds = array<i64: 1, 1, 1>, scalar_prefetch = 0 : i64, scratch_operands = 1 : i64, tpu.core_type = #tpu.core_type<tc>, window_params = [{transform_indices = @transform_0, window_bounds = array<i64: 16, 32>}, {transform_indices = @transform_1, window_bounds = array<i64: 32, 96>}, {transform_indices = @transform_2, window_bounds = array<i64: 16, 96>}]} {
    %c0_i32 = arith.constant 0 : i32
    %0 = arith.cmpi eq, %arg2, %c0_i32 : i32
    %1 = arith.extui %0 : i1 to i32
    %c0_i32_0 = arith.constant 0 : i32
    %2 = arith.cmpi ne, %1, %c0_i32_0 : i32
    scf.if %2 {
      %cst_10 = arith.constant 0.000000e+00 : f32
      %12 = vector.broadcast %cst_10 : f32 to vector<16x96xf32>
      %c0_11 = arith.constant 0 : index
      %c0_12 = arith.constant 0 : index
      %13 = vector.load %arg6[%c0_11, %c0_12] : memref<16x96xf32, #tpu.memory_space<vmem>>, vector<16x96xf32>
      tpu.vector_store %arg6[%c0_11, %c0_12], %12 {strides = array<i32>} : memref<16x96xf32, #tpu.memory_space<vmem>>, vector<16x96xf32>,
    } else {
    }
    %c0 = arith.constant 0 : index
    %c0_1 = arith.constant 0 : index
    %3 = vector.load %arg6[%c0, %c0_1] : memref<16x96xf32, #tpu.memory_space<vmem>>, vector<16x96xf32>
    %c0_2 = arith.constant 0 : index
    %c0_3 = arith.constant 0 : index
    %4 = vector.load %arg3[%c0_2, %c0_3] : memref<16x32xf32, #tpu.memory_space<vmem>>, vector<16x32xf32>
    %c0_4 = arith.constant 0 : index
    %c0_5 = arith.constant 0 : index
    %5 = vector.load %arg4[%c0_4, %c0_5] : memref<32x96xf32, #tpu.memory_space<vmem>>, vector<32x96xf32>
    %cst = arith.constant dense<0.000000e+00> : vector<16x96xf32>
    %6 = tpu.matmul %4, %5, %cst {dimension_numbers = #tpu.dot_dimension_numbers<[1], [0], [0], [1], [0, 0, 1, 1], [], []>} : vector<16x32xf32>, vector<32x96xf32>, vector<16x96xf32> -> vector<16x96xf32>
    %7 = arith.addf %3, %6 : vector<16x96xf32>
    %c0_6 = arith.constant 0 : index
    %c0_7 = arith.constant 0 : index
    %8 = vector.load %arg6[%c0_6, %c0_7] : memref<16x96xf32, #tpu.memory_space<vmem>>, vector<16x96xf32>
    tpu.vector_store %arg6[%c0_6, %c0_7], %7 {strides = array<i32>} : memref<16x96xf32, #tpu.memory_space<vmem>>, vector<16x96xf32>,
    %c0_i32_8 = arith.constant 0 : i32
    %9 = arith.cmpi eq, %arg2, %c0_i32_8 : i32
    %10 = arith.extui %9 : i1 to i32
    %c0_i32_9 = arith.constant 0 : i32
    %11 = arith.cmpi ne, %10, %c0_i32_9 : i32
    scf.if %11 {
      %c0_10 = arith.constant 0 : index
      %c0_11 = arith.constant 0 : index
      %12 = vector.load %arg6[%c0_10, %c0_11] : memref<16x96xf32, #tpu.memory_space<vmem>>, vector<16x96xf32>
      %c0_12 = arith.constant 0 : index
      %c0_13 = arith.constant 0 : index
      %13 = vector.load %arg5[%c0_12, %c0_13] : memref<16x96xf32, #tpu.memory_space<vmem>>, vector<16x96xf32>
      tpu.vector_store %arg5[%c0_12, %c0_13], %12 {strides = array<i32>} : memref<16x96xf32, #tpu.memory_space<vmem>>, vector<16x96xf32>,
    } else {
    }
    return
  }
  func.func @transform_0(%arg0: i32, %arg1: i32, %arg2: i32) -> (i32, i32) {
    %c0_i32 = arith.constant 0 : i32
    return %arg0, %arg2 : i32, i32
  }
  func.func @transform_1(%arg0: i32, %arg1: i32, %arg2: i32) -> (i32, i32) {
    %c0_i32 = arith.constant 0 : i32
    return %arg2, %arg1 : i32, i32
  }
  func.func @transform_2(%arg0: i32, %arg1: i32, %arg2: i32) -> (i32, i32) {
    %c0_i32 = arith.constant 0 : i32
    return %arg0, %arg1 : i32, i32
  }
}

</mosaic_0001>

<bundles_post_ra>
// kernel: tpu_custom_call.1
= control target key start
LH: loop header
LB: loop body
LE: loop exit
PB: predicated region body
PF: predicated region fallthrough
CT: control target
= control target key end

     0   :  { %7 = vsyncpa [#allocation4], 0  ;;  %s305_s0 = inlined_call_operand.hbm [shape: f32[16,32], index: 0, kind: input, shape index: {}]   ;;  %s306_s1 = inlined_call_operand.hbm [shape: f32[32,96], index: 1, kind: input, shape index: {}]   ;;  %s307_s2 = inlined_call_operand.hbm [shape: f32[16,96], index: 2, kind: output, shape index: {}]  }
   0x1   :  { %8 = vsyncpa [#allocation7], 0 }
   0x2   :  { %9 = vsyncpa [#allocation5], 0  ;;  %s258_s9 = smov [#allocation3]  }
   0x3   :  { %s15_s10 = sshll.u32 %s258_s9, 4  ;;  %s16_s10 = int_to_ptr.vmem [resolvable:$true] %s15_s10 }
   0x4   :  { %s200_s11 = scalar_lea.vmem %s16_s10, 256  ;;  %p205_p1 = scmp.lt.s32.totalorder %s16_s10, %s16_s10 }
   0x5   :  { %p201_p0 = scmp.ne.s32.totalorder %s16_s10, %s200_s11  ;;  %p206_p2 = scmp.lt.s32.totalorder %s200_s11, %s200_s11 }
   0x7   :  { %p207_p3 = por %p206_p2, %p205_p1 }
   0x9   :  { %p208_p4 = pnand %p207_p3, %p201_p0 }
   0xb   :  { %211 = shalt.err (!%p208_p4)
}
   0xc   :  { %s259_s12 = smov 128   ;;  %s260_s13 = smov 8  }
   0xd   :  { %21 = dma.hbm_to_vmem [thread:$0]  %s305_s0, 256, %s16_s10, [#allocation4], %s259_s12, %s259_s12, %s260_s13  }
   0xe   :  { %s261_s16 = smov [#allocation6]  }
   0xf   :  { %s27_s17 = sshll.u32 %s261_s16, 4  ;;  %s28_s17 = int_to_ptr.vmem [resolvable:$true] %s27_s17 }
  0x10   :  { %s220_s18 = scalar_lea.vmem %s28_s17, 512  ;;  %p225_p6 = scmp.lt.s32.totalorder %s28_s17, %s28_s17 }
  0x11   :  { %p221_p5 = scmp.ne.s32.totalorder %s28_s17, %s220_s18  ;;  %p226_p7 = scmp.lt.s32.totalorder %s220_s18, %s220_s18 }
  0x13   :  { %p227_p8 = por %p226_p7, %p225_p6 }
  0x15   :  { %p228_p9 = pnand %p227_p8, %p221_p5 }
  0x17   :  { %231 = shalt.err (!%p228_p9)
}
  0x18   :  { %33 = dma.hbm_to_vmem [thread:$0]  %s306_s1, 512, %s28_s17, [#allocation7], %s259_s12, %s259_s12, %s260_s13  }
  0x19   :  { %252 = dma.done.wait [#allocation4], 256  }
  0x1a   :  { %253 = vsyncadd [#allocation4], 4294967040 }
  0x1b   :  { %254 = dma.done.wait [#allocation7], 512  }
  0x1c   :  { %255 = vsyncadd [#allocation7], 4294966784  ;;  %vm44_vm0 = vcmask 785408   ;;  %v262_v0 = vmov 0.0   ;;  %vm55_vm1 = vcmask 261120   ;;  %v54_v1 = vld [vmem:[#allocation6 + $0x18] sm:$0xff] }
  0x1d   :  { %46 = vst.msk [vmem:[#allocation2 + $0x8] sm:$0xff] %vm44_vm0, %v262_v0  ;;  %45 = vst.msk [vmem:[#allocation2] sm:$0xff] %vm44_vm0, %v262_v0  ;;  %v53_v2 = vld [vmem:[#allocation6 + $0x10] sm:$0xff]  ;;  %175 = vmatprep.subr.mxu0 %v54_v1  ;;  %v52_v4 = vld [vmem:[#allocation6 + $0x8] sm:$0xff]  ;;  %s263_s0 = smov [#allocation8]  }
  0x1e   :  { %v49_v3 = vld [vmem:[#allocation3] sm:$0xff]  ;;  %176 = vmatpush3.msra.mxu0 %v54_v1  ;;  %v51_v5 = vld [vmem:[#allocation6] sm:$0xff]  ;;  %v50_v6 = vld [vmem:[#allocation3 + $0x8] sm:$0xff]  ;;  %s154_s1 = sshll.u32 %s263_s0, 4  ;;  %s155_s1 = int_to_ptr.vmem [resolvable:$true] %s154_s1 }
  0x1f   :  { %183 = vmatprep.mubr.msk.f32.mxu0 %vm55_vm1, %v49_v3  ;;  %177 = vmatprep.subr.mxu0 %v53_v2  ;;  %s232_s21 = scalar_lea.vmem %s155_s1, 256  ;;  %p237_p11 = scmp.lt.s32.totalorder %s155_s1, %s155_s1 }
  0x20   :  { %178 = vmatpush3.msra.mxu0 %v53_v2  ;;  %p233_p10 = scmp.ne.s32.totalorder %s155_s1, %s232_s21  ;;  %p238_p12 = scmp.lt.s32.totalorder %s232_s21, %s232_s21 }
  0x21   :  { %179 = vmatprep.subr.mxu0 %v52_v4 }
  0x22   :  { %180 = vmatpush3.msra.mxu0 %v52_v4  ;;  %p239_p13 = por %p238_p12, %p237_p11 }
  0x23   :  { %181 = vmatprep.subr.mxu0 %v51_v5 }
  0x24   :  { %182 = vmatpush3.msra.mxu0 %v51_v5  ;;  %v48_v7 = vld [vmem:[#allocation2 + $0x8] sm:$0xff]  ;;  %v47_v9 = vld [vmem:[#allocation2] sm:$0xff]  ;;  %p240_p0 = pnand %p239_p13, %p233_p10 }
  0x25   :  { %184 = vmatmul.mubr.msk.f32.vlgmr.msra.gmra.mxu0 %vm55_vm1, %v50_v6 }
  0xe5   :  { %v185_v8 = vpop.f32.mrf.mxu0 }
  0xe6   :  { %v138_v10 = vadd.f32 %v185_v8, %v48_v7 }
  0xe7   :  { %v128_v11 = vpop.f32.mrf.mxu0 }
  0xe8   :  { %141 = vst.msk [vmem:[#allocation2 + $0x8] sm:$0xff] %vm44_vm0, %v138_v10  ;;  %v137_v12 = vadd.f32 %v128_v11, %v47_v9 }
  0xea   :  { %140 = vst.msk [vmem:[#allocation2] sm:$0xff] %vm44_vm0, %v137_v12 }
  0xef   :  { %v146_v13 = vld [vmem:[#allocation2 + $0x8] sm:$0xff] }
  0xf0   :  { %148 = vst.msk [vmem:[#allocation8 + $0x8] sm:$0xff] %vm44_vm0, %v146_v13 }
  0xf1   :  { %v145_v14 = vld [vmem:[#allocation2] sm:$0xff] }
  0xf2   :  { %147 = vst.msk [vmem:[#allocation8] sm:$0xff] %vm44_vm0, %v145_v14 }
  0xf3   :  { %243 = shalt.err (!%p240_p0)
}
  0xf4   :  { %160 = dma.vmem_to_hbm [thread:$0]  %s155_s1, 256, %s307_s2, [#allocation5], %s259_s12, %s259_s12, %s260_s13  }
  0xf5   :  { %256 = dma.done.wait [#allocation5], 256  }
  0xf6   :  { %257 = vsyncadd [#allocation5], 4294967040 }
  0xf7   :  { %164 = vsyncpa [#allocation4], 1 }
  0xf8   :  { %165 = vsyncpa [#allocation7], 1 }
  0xf9   :  { %166 = vsyncpa [#allocation5], 1 }

</bundles_post_ra>
